<compile_context>
chip_gen: v7x
topology: tpu7x:2x2x1
jax: 0.10.0
libtpu: 0.0.40
codegen_flags: <defaults>
</compile_context>

<pallas_src>
import functools

import jax
import jax.numpy as jnp
from jax.experimental import pallas as pl
from jax.experimental.pallas import tpu as pltpu


def _b2s_kernel(x_ref, o_ref, *, k, n_w, C):
    # x_ref: (1, 1, n_w, C*k*k)  -- one row-band of patches, lane-dense.
    # o_ref: (1, C, 1, k, n_w*k) -- matching NCHW output band
    #        (row-major identical to (1, C, k, n_w*k)).
    x = x_ref[...].reshape(n_w, C * k, k)        # [pw, c*k+i, j]
    y = jnp.transpose(x, (1, 0, 2))              # [c*k+i, pw, j]
    o_ref[...] = y.reshape(1, C, 1, k, n_w * k)  # [c, i, pw*k+j]


def batch2space(x, B, C, H, W, kernel_size):
    """Pallas implementation of Batch2Space.forward.

    Args:
      x: (B*L, C, k, k) array of patches (NCHW patch layout, like PyTorch).
      B, C, H, W: target batch / channels / spatial size.
      kernel_size: patch size (stride == kernel_size).

    Returns:
      (B, C, H, W) array.
    """
    k = int(kernel_size)
    N, Cx, kh, kw = x.shape
    assert Cx == C and kh == k and kw == k, (x.shape, C, k)
    L = N // B
    n_h = (H - k) // k + 1
    n_w = (W - k) // k + 1
    assert n_h * n_w == L, (n_h, n_w, L)
    H_fill, W_fill = n_h * k, n_w * k

    # Free row-major reshape: (B*L, C, k, k) -> (B, n_h, n_w, C*k*k).
    x_r = x.reshape(B, n_h, n_w, C * k * k)

    kernel = functools.partial(_b2s_kernel, k=k, n_w=n_w, C=C)

    out = pl.pallas_call(
        kernel,
        out_shape=jax.ShapeDtypeStruct((B, C, n_h, k, W_fill), x.dtype),
        grid_spec=pltpu.PrefetchScalarGridSpec(
            num_scalar_prefetch=0,
            grid=(B, n_h),
            in_specs=[
                pl.BlockSpec((1, 1, n_w, C * k * k),
                             lambda b, ph: (b, ph, 0, 0)),
            ],
            out_specs=pl.BlockSpec((1, C, 1, k, W_fill),
                                   lambda b, ph: (b, 0, ph, 0, 0)),
        ),
        compiler_params=pltpu.CompilerParams(
            dimension_semantics=("parallel", "parallel"),
        ),
    )(x_r)

    # Free metadata reshape back to NCHW.
    out = out.reshape(B, C, H_fill, W_fill)

    # F.fold leaves uncovered trailing rows/cols as zeros (only when H or W
    # is not a multiple of k). Plain-JAX glue; no-op in the common case.
    if H_fill != H or W_fill != W:
        out = jnp.pad(out, ((0, 0), (0, 0), (0, H - H_fill), (0, W - W_fill)))
    return out


def _batch2space_ref(x, B, C, H, W, kernel_size):
    """Pure-JAX reference (mirrors PyTorch view + permute + fold)."""
    k = int(kernel_size)
    n_h = (H - k) // k + 1
    n_w = (W - k) // k + 1
    xr = x.reshape(B, n_h, n_w, C, k, k)
    xr = jnp.transpose(xr, (0, 3, 1, 4, 2, 5))      # (B, C, n_h, k, n_w, k)
    out = xr.reshape(B, C, n_h * k, n_w * k)
    return jnp.pad(out, ((0, 0), (0, 0), (0, H - n_h * k), (0, W - n_w * k)))


if __name__ == "__main__":
    key = jax.random.PRNGKey(0)
    B, C, H, W = 2, 4, 16, 16
    kernel_size = 4
    n_h = (H - kernel_size) // kernel_size + 1
    n_w = (W - kernel_size) // kernel_size + 1
    L = n_h * n_w

    x = jax.random.normal(key, (B * L, C, kernel_size, kernel_size),
                          dtype=jnp.float32)

    out = jax.block_until_ready(batch2space(x, B, C, H, W, kernel_size))
    ref = _batch2space_ref(x, B, C, H, W, kernel_size)
    assert out.shape == (B, C, H, W), (out.shape, (B, C, H, W))
    assert jnp.allclose(out, ref), "Pallas Batch2Space mismatch vs reference"

    # Edge case: H, W not multiples of k (fold leaves zero rows/cols).
    H2, W2 = 18, 14
    n_h2 = (H2 - kernel_size) // kernel_size + 1
    n_w2 = (W2 - kernel_size) // kernel_size + 1
    x2 = jax.random.normal(jax.random.PRNGKey(1),
                           (B * n_h2 * n_w2, C, kernel_size, kernel_size),
                           dtype=jnp.float32)
    out2 = jax.block_until_ready(batch2space(x2, B, C, H2, W2, kernel_size))
    ref2 = _batch2space_ref(x2, B, C, H2, W2, kernel_size)
    assert out2.shape == (B, C, H2, W2)
    assert jnp.allclose(out2, ref2), "Pallas Batch2Space mismatch (ragged case)"

    print("KERNEL_OK")
</pallas_src>

<mosaic_0001>
module attributes {stable_mosaic.version = 11 : i64} {
  func.func @_b2s_kernel(%arg0: i32, %arg1: i32, %arg2: memref<1x1x4x64xf32, #tpu.memory_space<vmem>>, %arg3: memref<1x4x1x4x16xf32, #tpu.memory_space<vmem>>) attributes {dimension_semantics = [#tpu.dimension_semantics<parallel>, #tpu.dimension_semantics<parallel>], iteration_bounds = array<i64: 2, 4>, scalar_prefetch = 0 : i64, scratch_operands = 0 : i64, tpu.core_type = #tpu.core_type<tc>, window_params = [{transform_indices = @transform_0, window_bounds = array<i64: 1, 1, 4, 64>}, {transform_indices = @transform_1, window_bounds = array<i64: 1, 4, 1, 4, 16>}]} {
    %c0 = arith.constant 0 : index
    %c0_0 = arith.constant 0 : index
    %c0_1 = arith.constant 0 : index
    %c0_2 = arith.constant 0 : index
    %0 = vector.load %arg2[%c0, %c0_0, %c0_1, %c0_2] : memref<1x1x4x64xf32, #tpu.memory_space<vmem>>, vector<1x1x4x64xf32>
    %1 = vector.shape_cast %0 : vector<1x1x4x64xf32> to vector<4x16x4xf32>
    %2 = tpu.transpose %1, [1, 0, 2] : vector<4x16x4xf32> -> vector<16x4x4xf32>
    %3 = vector.shape_cast %2 : vector<16x4x4xf32> to vector<1x4x1x4x16xf32>
    %c0_3 = arith.constant 0 : index
    %c0_4 = arith.constant 0 : index
    %c0_5 = arith.constant 0 : index
    %c0_6 = arith.constant 0 : index
    %c0_7 = arith.constant 0 : index
    %4 = vector.load %arg3[%c0_3, %c0_4, %c0_5, %c0_6, %c0_7] : memref<1x4x1x4x16xf32, #tpu.memory_space<vmem>>, vector<1x4x1x4x16xf32>
    tpu.vector_store %arg3[%c0_3, %c0_4, %c0_5, %c0_6, %c0_7], %3 {strides = array<i32>} : memref<1x4x1x4x16xf32, #tpu.memory_space<vmem>>, vector<1x4x1x4x16xf32>,
    return
  }
  func.func @transform_0(%arg0: i32, %arg1: i32) -> (i32, i32, i32, i32) {
    %c0_i32 = arith.constant 0 : i32
    %c0_i32_0 = arith.constant 0 : i32
    %c0_i32_1 = arith.constant 0 : i32
    return %arg0, %arg1, %c0_i32, %c0_i32_0 : i32, i32, i32, i32
  }
  func.func @transform_1(%arg0: i32, %arg1: i32) -> (i32, i32, i32, i32, i32) {
    %c0_i32 = arith.constant 0 : i32
    %c0_i32_0 = arith.constant 0 : i32
    %c0_i32_1 = arith.constant 0 : i32
    %c0_i32_2 = arith.constant 0 : i32
    return %arg0, %c0_i32, %arg1, %c0_i32_0, %c0_i32_1 : i32, i32, i32, i32, i32
  }
}

</mosaic_0001>

<bundles_post_ra>
// kernel: tpu_custom_call.1
= control target key start
LH: loop header
LB: loop body
LE: loop exit
PB: predicated region body
PF: predicated region fallthrough
CT: control target
= control target key end

     0   :  { %6 = vsyncpa [#allocation3], 0  ;;  %s1343_s0 = inlined_call_operand.hbm [shape: f32[2,4,4,64], index: 0, kind: input, shape index: {}]   ;;  %s1344_s1 = inlined_call_operand.hbm [shape: f32[2,4,4,4,16], index: 1, kind: output, shape index: {}]  }
   0x1   :  { %8 = vsyncpa [#allocation3 + $0x1], 0 }
   0x2   :  { %9 = vsyncpa [#allocation4], 0 }
   0x3   :  { %11 = vsyncpa [#allocation4 + $0x1], 0  ;;  %s1069_s6 = smov 0   ;;  %s1071_s7 = smov 0  }
   0x4   :  { %s1073_s8 = smov 0   ;;  %s1075_s9 = smov 0  }
   0x5   :  { %s1077_s10 = smov 0   ;;  %s1079_s11 = smov 0  }
   0x6   :  { %s1081_s12 = smov 0   ;;  %s1083_s13 = smov 0  }
   0x7 LB: > { %s776_s14 = sadd.s32 4294967295, %s1032_s13   ;;  %s777_s15 = sadd.s32 4294967294, %s1032_s13   ;;  %s1032_s13 = sphi %s1083_s13, %s17_s13   ;;  %s1028_s12 = sphi %s1081_s12, %s1361_s12   ;;  %s1024_s11 = sphi %s1079_s11, %s1360_s11   ;;  %s1020_s10 = sphi %s1077_s10, %s1359_s10   ;;  %s1016_s9 = sphi %s1075_s9, %s1358_s9   ;;  %s1012_s8 = sphi %s1073_s8, %s1357_s8   ;;  %s1008_s7 = sphi %s1071_s7, %s1356_s7   ;;  %s1004_s6 = sphi %s1069_s6, %s1355_s6  }
   0x8   : > { %s26_s16 = sadd.s32 1, %s1024_s11  ;;  %s29_s17 = sadd.s32 1, %s1028_s12 }
   0x9   : > { %p27_p0 = scmp.ge.s32.totalorder %s26_s16, 4  ;;  %s38_s18 = sadd.s32 1, %s1012_s8 }
   0xa   : > { %p45_p1 = scmp.ne.s32.totalorder %s1012_s8, %s1008_s7  ;;  %p46_p2 = scmp.eq.s32.totalorder %s1032_s13, 0 }
   0xb   : > { %s1363_s16 = smov (%p27_p0, %s26_s16), 0  ;;  %s1365_s17 = smov (!%p27_p0, %s29_s17), %s1028_s12 }
   0xc   : > { %s34_s19 = ssub.s32 %s1024_s11, %s1363_s16  ;;  %p1122_p3 = por %p46_p2, %p45_p1 }
   0xd   : > { %p31_p4 = scmp.ge.s32.totalorder %s1365_s17, 2  ;;  %p51_p5 = scmp.ne.s32.totalorder %s1008_s7, %s1004_s6 }
   0xe   : > { %p52_p6 = scmp.eq.s32.totalorder %s776_s14, 0  ;;  %p77_p7 = scmp.eq.s32.totalorder %s776_s14, 7 }
   0xf   : > { %s1367_s17 = smov (%p31_p4, %s1365_s17), 0  ;;  %p83_p10 = scmp.eq.s32.totalorder %s777_s15, 7 }
  0x10   : > { %p1130_p8 = por %p52_p6, %p51_p5  ;;  %p1134_p9 = por %p77_p7, %p45_p1 }
  0x11   : > { %s33_s23 = ssub.s32 %s1028_s12, %s1367_s17  ;;  %p1140_p12 = por %p83_p10, %p51_p5 }
  0x12   : > { %s1348_s22 = scalar_select %p1134_p9, 1, 0 }
  0x13   : > { %s35_s24 = sor.u32 %s34_s19, %s33_s23  ;;  %p815_p13 = scmp.lt.s32.totalorder %s1032_s13, 8 }
  0x14   : > { %p36_p11 = scmp.eq.s32.totalorder %s35_s24, 0  ;;  %s103_s26 = sand.u32 1, %s1012_s8  }
  0x15   : > { %s1349_s25 = scalar_select %p1140_p12, 1, 0 }
  0x16   : > { %s1147_s27 = scalar_select %p36_p11, %s1012_s8, %s38_s18  }
  0x17   : > { %s780_s28 = sshll.u32 %s103_s26, 2  ;;  %s781_s29 = sshll.u32 %s1028_s12, 2 }
  0x18   : > { %s112_s30 = sadd.s32 %s1024_s11, %s781_s29  ;;  %s107_s2 = scalar_lea.vmem [#allocation2], %s780_s28 }
  0x19   : > { %s116_s3 = sshll.u32 %s107_s2, 4  ;;  %s782_s4 = sshll.u32 %s112_s30, 6  ;;  %s1151_s3 = int_to_ptr.vmem [resolvable:$true] %s116_s3 }
  0x1a   : > { %s1156_s15 = scalar_lea.hbm %s1343_s0, %s782_s4  ;;  %p1160_p0 = pnand %p815_p13, %p1122_p3 }
  0x1b   : > { %s104_s19 = scalar_lea.sflag [#allocation3], %s103_s26  ;;  %s904_s23 = scalar_lea.hbm %s1156_s15, 64 }
  0x1c   : > { %p905_p4 = scmp.ne.s32.totalorder %s1156_s15, %s904_s23  ;;  %p906_p5 = pneg %p1160_p0 }
  0x1d   : > { %s909_s28 = scalar_lea.hbm %s1343_s0, 512  ;;  %p910_p3 = scmp.lt.u32.totalorder %s1156_s15, %s1343_s0 }
  0x1e   : > { %p907_p6 = pnand %p906_p5, %p905_p4  ;;  %p911_p10 = scmp.lt.u32.totalorder %s909_s28, %s904_s23 }
  0x1f   : > { %p913_p13 = scmp.lt.u32.totalorder %s904_s23, %s1156_s15 }
  0x20   : > { %p908_p7 = pneg %p907_p6  ;;  %p912_p11 = por %p911_p10, %p910_p3 }
  0x22   : > { %p914_p1 = por %p913_p13, %p912_p11 }
  0x24   : > { %p915_p2 = pnand %p914_p1, %p908_p7 }
  0x26   : > { %918 = shalt.err (!%p915_p2)
}
  0x27   : > { %s919_s26 = scalar_lea.vmem %s1151_s3, 64  ;;  %s1034_s2 = smov [#allocation2]  }
  0x28   : > { %p920_p4 = scmp.ne.s32.totalorder %s1151_s3, %s919_s26  ;;  %s924_s4 = sshll.u32 %s1034_s2, 4  ;;  %s925_s4 = int_to_ptr.vmem [resolvable:$false] %s924_s4 }
  0x29   : > { %s926_s5 = scalar_lea.vmem %s925_s4, 128  ;;  %p927_p9 = scmp.lt.s32.totalorder %s1151_s3, %s925_s4 }
  0x2a   : > { %p922_p6 = pnand %p920_p4, %p906_p5  ;;  %p928_p3 = scmp.lt.s32.totalorder %s926_s5, %s919_s26 }
  0x2c   : > { %p923_p12 = pneg %p922_p6  ;;  %p929_p10 = por %p928_p3, %p927_p9 }
  0x2e   : > { %p930_p11 = pnand %p929_p10, %p923_p12 }
  0x30   : > { %933 = shalt.err (!%p930_p11)
}
  0x31   : > { %810 = dma.hbm_to_vmem [thread:$0]  (!%p1160_p0), %s1156_s15, 64, %s1151_s3, %s104_s19  }
  0x32   : > { %p1351_p1 = scmp.lt.s32.totalorder %s1032_s13, 9  ;;  %p1352_p2 = scmp.ge.s32.totalorder %s1032_s13, 1 }
  0x34   : > { %p122_p5 = pnand %p1352_p2, %p1351_p1 }
  0x35   : > { %s1196_s14 = sand.u32 (!%p122_p5), 1, %s1008_s7  }
  0x36   : > { %125 = sbr.rel (%p122_p5) target bundleno = 377 (0x179), region = 24  ;;  %s784_s23 = sshll.u32 (!%p122_p5), %s1196_s14, 2 }
  0x37   : > { %s128_s20 = scalar_lea.sflag (!%p122_p5), [#allocation3], %s1196_s14  ;;  %s131_s24 = scalar_lea.vmem (!%p122_p5), [#allocation2], %s784_s23 }
  0x3d   : > { %995 = dma.done.wait (%p1130_p8), %s128_s20, 64  }
  0x3e   : > { %997 = vsyncadd (%p1130_p8), %s128_s20, 4294967232  ;;  %v150_v0 = vld [vmem:[%s131_s24] sm:$0xf]  ;;  %s1035_s3 = smov 116   ;;  %s1036_s15 = smov 124   ;;  %v201_v3 = vlaneseq  ;;  %vm653_vm0 = vcmask 31744  }
  0x3f   : > { %158 = vrot.lane.b32.xlu1 %v150_v0, %s1035_s3  ;;  %152 = vrot.lane.b32.xlu0 %v150_v0, %s1036_s15  ;;  %s1037_s18 = smov 112   ;;  %s1038_s19 = smov 120   ;;  %v1050_v1 = vmov 1983009808   ;;  %v1051_v6 = vmov 1934713408  }
  0x40   : > { %s1039_s28 = smov 104   ;;  %s1040_s29 = smov 108   ;;  %v199_v2 = vunpack.c.l.s4 %v1050_v1  ;;  %v202_v5 = vshrl.u32 %v201_v3, 7  ;;  %v232_v7 = vunpack.c.l.s4 %v1051_v6  ;;  %vm658_vm1 = vcmask 64512  }
  0x41   : > { %s1041_s30 = smov 96   ;;  %s1042_s26 = smov 100   ;;  %vm663_vm2 = vcmask 97280   ;;  %vm668_vm3 = vcmask 125952  }
  0x42   : > { %s1043_s2 = smov 88   ;;  %s1044_s21 = smov 92   ;;  %v200_v4 = vunpack.c.0.s8 %v199_v2  ;;  %v233_v12 = vunpack.c.0.s8 %v232_v7 }
  0x43   : > { %161 = vrot.lane.b32.xlu1 %v150_v0, %s1037_s18  ;;  %155 = vrot.lane.b32.xlu0 %v150_v0, %s1038_s19  ;;  %s1045_s4 = smov 80   ;;  %s1046_s5 = smov 84  }
  0x44   : > { %s1047_s23 = smov 72   ;;  %s1048_s20 = smov 76   ;;  %v1204_v10 = vsub.s32 %v200_v4, %v202_v5  ;;  %v1207_v17 = vsub.s32 %v233_v12, %v202_v5 }
  0x45   : > { %s1049_s24 = smov 68   ;;  %s1052_s3 = smov 8  }
  0x46   : > { %s1054_s15 = smov 4   ;;  %s1055_s18 = smov 12  }
  0x47   : > { %167 = vrot.lane.b32.xlu1 %v150_v0, %s1039_s28  ;;  %164 = vrot.lane.b32.xlu0 %v150_v0, %s1040_s29  ;;  %s785_s19 = sshll.u32 %s1196_s14, 4  ;;  %s799_s29 = sshll.u32 %s1020_s10, 4 }
  0x48   : > { %s149_s28 = scalar_lea.vmem [#allocation5], %s785_s19  ;;  %p1353_p9 = scmp.ne.s32.totalorder %s1348_s22, 0 }
  0x4b   : > { %173 = vrot.lane.b32.xlu1 %v150_v0, %s1041_s30  ;;  %170 = vrot.lane.b32.xlu0 %v150_v0, %s1042_s26  ;;  %s685_s30 = sadd.s32 %s1016_s9, %s799_s29  ;;  %s688_s26 = sshll.u32 %s149_s28, 4  ;;  %s1279_s26 = int_to_ptr.vmem [resolvable:$true] %s688_s26 }
  0x4f   : > { %179 = vrot.lane.b32.xlu1 %v150_v0, %s1043_s2  ;;  %176 = vrot.lane.b32.xlu0 %v150_v0, %s1044_s21  ;;  %s800_s2 = sshll.u32 %s685_s30, 6 }
  0x50   : > { %s1285_s21 = scalar_lea.hbm %s1344_s1, %s800_s2 }
  0x53   : > { %185 = vrot.lane.b32.xlu1 %v150_v0, %s1045_s4  ;;  %182 = vrot.lane.b32.xlu0 %v150_v0, %s1046_s5  ;;  %s674_s4 = scalar_lea.sflag [#allocation4], %s1196_s14  ;;  %s934_s5 = scalar_lea.vmem %s1279_s26, 256 }
  0x54   : > { %p935_p8 = scmp.ne.s32.totalorder %s1279_s26, %s934_s5 }
  0x56   : > { %p936_p12 = pnand %p935_p8, %p1353_p9 }
  0x57   : > { %191 = vrot.lane.b32.xlu1 %v150_v0, %s1047_s23  ;;  %188 = vrot.lane.b32.xlu0 %v150_v0, %s1048_s20  ;;  %s1056_s23 = smov [#allocation5]  }
  0x58   : > { %p937_p0 = pneg %p936_p12  ;;  %s938_s20 = sshll.u32 %s1056_s23, 4  ;;  %s939_s20 = int_to_ptr.vmem [resolvable:$false] %s938_s20 }
  0x59   : > { %p941_p7 = scmp.lt.s32.totalorder %s1279_s26, %s939_s20 }
  0x5b   : > { %194 = vrot.lane.b32.xlu0 %v150_v0, %s1049_s24  ;;  %s940_s24 = scalar_lea.vmem %s939_s20, 512 }
  0x5c   : > { %p942_p13 = scmp.lt.s32.totalorder %s940_s24, %s934_s5 }
  0x5e   : > { %p943_p4 = por %p942_p13, %p941_p7 }
  0x60   : > { %p944_p6 = pnand %p943_p4, %p937_p0 }
  0xb1   : > { %v159_v8 = vpop.permute.xlu1 %158  ;;  %v153_v9 = vpop.permute.xlu0 %152 }
  0xb2   : > { %v205_v11 = vcombine.low %v153_v9, %v159_v8 }
  0xb4   : > { %v212_v16 = vrot.slane %v205_v11, %v1204_v10 }
  0xb5   : > { %v162_v13 = vpop.permute.xlu1 %161  ;;  %v156_v14 = vpop.permute.xlu0 %155 }
  0xb6   : > { %v197_v15 = vcombine.low %v150_v0, %v156_v14 }
  0xb8   : > { %v204_v18 = vrot.slane %v197_v15, %v1204_v10 }
  0xb9   : > { %v168_v19 = vpop.permute.xlu1 %167  ;;  %v165_v20 = vpop.permute.xlu0 %164 }
  0xba   : > { %v229_v21 = vcombine.low %v204_v18, %v212_v16  ;;  %v230_v22 = vcombine.high %v204_v18, %v212_v16  ;;  %v213_v25 = vcombine.low %v162_v13, %v168_v19 }
  0xbc   : > { %v237_v23 = vrot.slane %v229_v21, %v1207_v17  ;;  %v244_v24 = vrot.slane %v230_v22, %v1207_v17  ;;  %v220_v33 = vrot.slane %v213_v25, %v1204_v10 }
  0xbd   : > { %v174_v26 = vpop.permute.xlu1 %173  ;;  %v171_v27 = vpop.permute.xlu0 %170 }
  0xbe   : > { %v786_v28 = vcombine.low %v237_v23, %v244_v24  ;;  %v788_v29 = vcombine.high %v237_v23, %v244_v24  ;;  %v221_v30 = vcombine.low %v165_v20, %v171_v27 }
  0xc0   : > { %v341_v31 = vrot.slane %v786_v28, %v1204_v10  ;;  %v357_v32 = vrot.slane %v788_v29, %v1204_v10  ;;  %v228_v34 = vrot.slane %v221_v30, %v1204_v10 }
  0xc1   : > { %v180_v35 = vpop.permute.xlu1 %179  ;;  %v177_v36 = vpop.permute.xlu0 %176 }
  0xc2   : > { %v365_v37 = vcombine.low %v341_v31, %v357_v32  ;;  %v366_v38 = vcombine.high %v341_v31, %v357_v32  ;;  %v245_v39 = vcombine.low %v220_v33, %v228_v34  ;;  %v246_v40 = vcombine.high %v220_v33, %v228_v34 }
  0xc3   : > { %v265_v41 = vcombine.low %v174_v26, %v180_v35 }
  0xc4   : > { %v253_v42 = vrot.slane %v245_v39, %v1207_v17  ;;  %v260_v43 = vrot.slane %v246_v40, %v1207_v17  ;;  %v373_v44 = vrot.slane %v365_v37, %v1207_v17  ;;  %v380_v45 = vrot.slane %v366_v38, %v1207_v17 }
  0xc5   : > { %v186_v46 = vpop.permute.xlu1 %185  ;;  %v183_v47 = vpop.permute.xlu0 %182  ;;  %v272_v52 = vrot.slane %v265_v41, %v1204_v10 }
  0xc6   : > { %v787_v48 = vcombine.low %v253_v42, %v260_v43  ;;  %v789_v49 = vcombine.high %v253_v42, %v260_v43  ;;  %v273_v50 = vcombine.low %v177_v36, %v183_v47  ;;  %v469_v51 = vcombine.low %v373_v44, %v380_v45 }
  0xc7   : > { %v794_v53 = vcombine.high %v373_v44, %v380_v45 }
  0xc8   : > { %v348_v54 = vrot.slane %v787_v48, %v1204_v10  ;;  %v364_v55 = vrot.slane %v789_v49, %v1204_v10  ;;  %v280_v56 = vrot.slane %v273_v50, %v1204_v10  ;;  %v476_v57 = vrot.slane %v469_v51, %v1204_v10 }
  0xc9   : > { %v192_v58 = vpop.permute.xlu1 %191  ;;  %v189_v59 = vpop.permute.xlu0 %188  ;;  %v484_v60 = vrot.slane %v794_v53, %v1204_v10  ;;  %v1053_v51 = vmov 0.0  }
  0xca   : > { %v381_v61 = vcombine.low %v348_v54, %v364_v55  ;;  %v382_v62 = vcombine.high %v348_v54, %v364_v55  ;;  %v297_v63 = vcombine.low %v272_v52, %v280_v56  ;;  %v298_v0 = vcombine.high %v272_v52, %v280_v56 }
  0xcb   : > { %v281_v1 = vcombine.low %v186_v46, %v192_v58  ;;  %v486_v2 = vcombine.high %v476_v57, %v484_v60  ;;  %v485_v36 = vcombine.low %v476_v57, %v484_v60 }
  0xcc   : > { %v305_v3 = vrot.slane %v297_v63, %v1207_v17  ;;  %v312_v4 = vrot.slane %v298_v0, %v1207_v17  ;;  %v389_v5 = vrot.slane %v381_v61, %v1207_v17  ;;  %v396_v6 = vrot.slane %v382_v62, %v1207_v17 }
  0xcd   : > { %v195_v7 = vpop.permute.xlu0 %194  ;;  %v500_v8 = vrot.slane %v486_v2, %v1207_v17  ;;  %v288_v14 = vrot.slane %v281_v1, %v1204_v10  ;;  %v493_v44 = vrot.slane %v485_v36, %v1207_v17 }
  0xce   : > { %v790_v9 = vcombine.low %v305_v3, %v312_v4  ;;  %v792_v11 = vcombine.high %v305_v3, %v312_v4  ;;  %v289_v12 = vcombine.low %v189_v59, %v195_v7  ;;  %v503_v13 = vcombine.low %v389_v5, %v396_v6 }
  0xcf   : > { %625 = vrot.lane.b32.xlu1 %v500_v8, %s1052_s3  ;;  %v795_v15 = vcombine.high %v389_v5, %v396_v6  ;;  %v501_v52 = vcombine.high %v493_v44, %v1053_v51  ;;  %v502_v62 = vcombine.high %v500_v8, %v1053_v51 }
  0xd0   : > { %v409_v16 = vrot.slane %v790_v9, %v1204_v10  ;;  %v425_v18 = vrot.slane %v792_v11, %v1204_v10  ;;  %v296_v19 = vrot.slane %v289_v12, %v1204_v10  ;;  %v510_v20 = vrot.slane %v503_v13, %v1204_v10 }
  0xd1   : > { %v518_v21 = vrot.slane %v795_v15, %v1204_v10 }
  0xd2   : > { %v433_v22 = vcombine.low %v409_v16, %v425_v18  ;;  %v434_v23 = vcombine.high %v409_v16, %v425_v18  ;;  %v313_v24 = vcombine.low %v288_v14, %v296_v19  ;;  %v314_v25 = vcombine.high %v288_v14, %v296_v19 }
  0xd3   : > { %v520_v26 = vcombine.high %v510_v20, %v518_v21  ;;  %v519_v56 = vcombine.low %v510_v20, %v518_v21 }
  0xd4   : > { %v321_v27 = vrot.slane %v313_v24, %v1207_v17  ;;  %v328_v28 = vrot.slane %v314_v25, %v1207_v17  ;;  %v441_v29 = vrot.slane %v433_v22, %v1207_v17  ;;  %v448_v30 = vrot.slane %v434_v23, %v1207_v17 }
  0xd5   : > { %v534_v31 = vrot.slane %v520_v26, %v1207_v17  ;;  %v527_v60 = vrot.slane %v519_v56, %v1207_v17 }
  0xd6   : > { %v791_v32 = vcombine.low %v321_v27, %v328_v28  ;;  %v793_v33 = vcombine.high %v321_v27, %v328_v28  ;;  %v537_v34 = vcombine.low %v441_v29, %v448_v30  ;;  %v796_v35 = vcombine.high %v441_v29, %v448_v30 }
  0xd7   : > { %627 = vrot.lane.b32.xlu0 %v534_v31, %s1052_s3  ;;  %v535_v63 = vcombine.high %v527_v60, %v1053_v51  ;;  %v536_v2 = vcombine.high %v534_v31, %v1053_v51 }
  0xd8   : > { %v416_v37 = vrot.slane %v791_v32, %v1204_v10  ;;  %v432_v38 = vrot.slane %v793_v33, %v1204_v10  ;;  %v544_v39 = vrot.slane %v537_v34, %v1204_v10  ;;  %v552_v40 = vrot.slane %v796_v35, %v1204_v10 }
  0xda   : > { %v449_v41 = vcombine.low %v416_v37, %v432_v38  ;;  %v450_v42 = vcombine.high %v416_v37, %v432_v38  ;;  %v554_v43 = vcombine.high %v544_v39, %v552_v40  ;;  %v553_v46 = vcombine.low %v544_v39, %v552_v40 }
  0xdc   : > { %v568_v45 = vrot.slane %v554_v43, %v1207_v17  ;;  %v457_v47 = vrot.slane %v449_v41, %v1207_v17  ;;  %v464_v48 = vrot.slane %v450_v42, %v1207_v17  ;;  %v561_v53 = vrot.slane %v553_v46, %v1207_v17 }
  0xde   : > { %629 = vrot.lane.b32.xlu1 %v568_v45, %s1052_s3  ;;  %v571_v49 = vcombine.low %v457_v47, %v464_v48  ;;  %v797_v50 = vcombine.high %v457_v47, %v464_v48  ;;  %v569_v58 = vcombine.high %v561_v53, %v1053_v51 }
  0xe0   : > { %v578_v54 = vrot.slane %v571_v49, %v1204_v10  ;;  %v586_v55 = vrot.slane %v797_v50, %v1204_v10  ;;  %v570_v10 = vcombine.high %v568_v45, %v1053_v51 }
  0xe2   : > { %609 = vrot.lane.b32.xlu1 %v501_v52, %s1054_s15  ;;  %v588_v57 = vcombine.high %v578_v54, %v586_v55  ;;  %v587_v61 = vcombine.low %v578_v54, %v586_v55 }
  0xe4   : > { %v602_v59 = vrot.slane %v588_v57, %v1207_v17  ;;  %v595_v0 = vrot.slane %v587_v61, %v1207_v17 }
  0xe6   : > { %613 = vrot.lane.b32.xlu1 %v569_v58, %s1054_s15  ;;  %631 = vrot.lane.b32.xlu0 %v602_v59, %s1052_s3  ;;  %v603_v1 = vcombine.high %v595_v0, %v1053_v51  ;;  %v604_v3 = vcombine.high %v602_v59, %v1053_v51 }
  0xea   : > { %641 = vrot.lane.b32.xlu1 %v502_v62, %s1055_s18  ;;  %611 = vrot.lane.b32.xlu0 %v535_v63, %s1054_s15 }
  0xee   : > { %645 = vrot.lane.b32.xlu1 %v570_v10, %s1055_s18  ;;  %615 = vrot.lane.b32.xlu0 %v603_v1, %s1054_s15 }
  0xf2   : > { %643 = vrot.lane.b32.xlu0 %v536_v2, %s1055_s18 }
  0xf6   : > { %647 = vrot.lane.b32.xlu0 %v604_v3, %s1055_s18 }
 0x141   : > { %v626_v4 = vpop.permute.xlu1 %625 }
 0x149   : > { %v628_v6 = vpop.permute.xlu0 %627 }
 0x150   : > { %v630_v5 = vpop.permute.xlu1 %629 }
 0x154   : > { %v610_v7 = vpop.permute.xlu1 %609 }
 0x155   : > { %v654_v9 = vsel %vm653_vm0, %v493_v44, %v610_v7 }
 0x156   : > { %v659_v11 = vsel %vm658_vm1, %v654_v9, %v626_v4 }
 0x158   : > { %v614_v17 = vpop.permute.xlu1 %613  ;;  %v632_v8 = vpop.permute.xlu0 %631 }
 0x159   : > { %v656_v14 = vsel %vm653_vm0, %v561_v53, %v614_v17 }
 0x15a   : > { %v661_v16 = vsel %vm658_vm1, %v656_v14, %v630_v5 }
 0x15c   : > { %v642_v12 = vpop.permute.xlu1 %641  ;;  %v612_v13 = vpop.permute.xlu0 %611 }
 0x15d   : > { %v664_v15 = vsel %vm663_vm2, %v659_v11, %v642_v12  ;;  %v655_v20 = vsel %vm653_vm0, %v527_v60, %v612_v13 }
 0x15e   : > { %669 = vst.msk [vmem:[%s149_s28] sm:$0xf] %vm668_vm3, %v664_v15  ;;  %v660_v22 = vsel %vm658_vm1, %v655_v20, %v628_v6 }
 0x160   : > { %v646_v18 = vpop.permute.xlu1 %645  ;;  %v616_v19 = vpop.permute.xlu0 %615 }
 0x161   : > { %v666_v21 = vsel %vm663_vm2, %v661_v16, %v646_v18  ;;  %v657_v24 = vsel %vm653_vm0, %v595_v0, %v616_v19 }
 0x162   : > { %671 = vst.msk [vmem:[%s149_s28 + $0x8] sm:$0xf] %vm668_vm3, %v666_v21  ;;  %v662_v26 = vsel %vm658_vm1, %v657_v24, %v632_v8 }
 0x164   : > { %v644_v23 = vpop.permute.xlu0 %643 }
 0x165   : > { %v665_v25 = vsel %vm663_vm2, %v660_v22, %v644_v23 }
 0x166   : > { %670 = vst.msk [vmem:[%s149_s28 + $0x4] sm:$0xf] %vm668_vm3, %v665_v25 }
 0x168   : > { %v648_v27 = vpop.permute.xlu0 %647 }
 0x169   : > { %v667_v28 = vsel %vm663_vm2, %v662_v26, %v648_v27 }
 0x16a   : > { %672 = vst.msk [vmem:[%s149_s28 + $0xc] sm:$0xf] %vm668_vm3, %v667_v28 }
 0x16b   : > { %947 = shalt.err (!%p944_p6)
}
 0x16c   : > { %s948_s3 = scalar_lea.hbm %s1285_s21, 256  ;;  %s952_s28 = scalar_lea.hbm %s1344_s1, 2048 }
 0x16d   : > { %p949_p3 = scmp.ne.s32.totalorder %s1285_s21, %s948_s3  ;;  %p953_p1 = scmp.lt.u32.totalorder %s1285_s21, %s1344_s1 }
 0x16e   : > { %p954_p2 = scmp.lt.u32.totalorder %s952_s28, %s948_s3  ;;  %p956_p8 = scmp.lt.u32.totalorder %s948_s3, %s1285_s21 }
 0x16f   : > { %p950_p10 = pnand %p949_p3, %p1353_p9 }
 0x170   : > { %p955_p5 = por %p954_p2, %p953_p1 }
 0x171   : > { %p951_p11 = pneg %p950_p10 }
 0x172   : > { %p957_p12 = por %p956_p8, %p955_p5 }
 0x174   : > { %p958_p0 = pnand %p957_p12, %p951_p11 }
 0x176   : > { %961 = shalt.err (!%p958_p0)
}
 0x177   : > { %s1057_s2 = smov 64   ;;  %s1058_s9 = smov 256  }
 0x178   : > { %805 = dma.vmem_to_hbm [thread:$0]  (%p1353_p9), %s1279_s26, 256, %s1285_s21, %s674_s4, %s1057_s2, %s1058_s9, %s1054_s15  }
 0x179 PF: > { %p816_p7 = scmp.ge.s32.totalorder %s1032_s13, 2  ;;  %s703_s10 = sand.u32 1, %s1004_s6  }
 0x17a   : > { %p1354_p13 = scmp.ne.s32.totalorder %s1349_s25, 0  ;;  %s704_s5 = scalar_lea.sflag [#allocation4], %s703_s10 }
 0x17c   : > { %p812_p4 = pnand %p816_p7, %p1354_p13 }
 0x17e   : > { %999 = dma.done.wait (!%p812_p4), %s704_s5, 256  }
 0x17f   : > { %1001 = vsyncadd (!%p812_p4), %s704_s5, 4294967040  ;;  %s17_s13 = sadd.s32 1, %s1032_s13   ;;  %s1355_s6 = smov %s1008_s7 }
 0x180   : > { %p14_p6 = scmp.ge.s32.totalorder %s17_s13, 10   ;;  %s1356_s7 = smov %s1012_s8 }
 0x181   : > { %s1357_s8 = smov %s1147_s27  ;;  %s1358_s9 = smov %s1024_s11 }
 0x182   : > { %s1359_s10 = smov %s1028_s12  ;;  %s1360_s11 = smov %s1363_s16 }
 0x183   : > { %s1361_s12 = smov %s1367_s17  ;;  %16 = sbr.rel (!%p14_p6) target bundleno = 7 (0x7), region = 69 }
 0x18a   :  { %709 = vsyncpa [#allocation3], 1 }
 0x18b   :  { %711 = vsyncpa [#allocation3 + $0x1], 1 }
 0x18c   :  { %712 = vsyncpa [#allocation4], 1 }
 0x18d   :  { %714 = vsyncpa [#allocation4 + $0x1], 1 }

</bundles_post_ra>
